<compile_context>
chip_gen: v7x
topology: tpu7x:2x2x1
jax: 0.10.0
libtpu: 0.0.40
codegen_flags: <defaults>
</compile_context>

<pallas_src>
import jax
import jax.numpy as jnp
from jax import lax
from jax.experimental import pallas as pl
from jax.experimental.pallas import tpu as pltpu

# ----------------------------------------------------------------------------
# Config (synthetic, small shapes consistent with the module)
# ----------------------------------------------------------------------------
HIDDEN = 128
VISUAL_LOSSES = ("obj", "attr", "feat")
VISUAL_LOSS_DIMS = {"obj": 16, "attr": 8, "feat": 32}   # config.visual_loss_config[key][0]
LN_EPS = 1e-12

LANE = 128        # TPU lane width (last-dim tiling unit)
SUBLANE = 8       # TPU sublane width (second-to-last-dim tiling unit, f32)
TM_MAX = 1024     # large row tiles reach ~86% of HBM roofline; VMEM use stays tiny
MIN_GRID_STEPS = 2  # keep >= 2 row tiles so both v7x TensorCores get work


def _round_up(x, m):
    return ((x + m - 1) // m) * m


def _gelu_erf(x):
    # PyTorch / BERT "gelu": x * 0.5 * (1 + erf(x / sqrt(2))). Kept erf-based (not the
    # tanh approximation) for parity with the PyTorch module.
    return 0.5 * x * (1.0 + lax.erf(x * (1.0 / jnp.sqrt(2.0).astype(x.dtype))))


# ----------------------------------------------------------------------------
# Kernel: one row tile per grid step.
#   x_ref    : (TM, H)        row tile of flattened hidden_states
#   wd_ref   : (H, H)         transform dense weight (resident)
#   bd_ref   : (1, H)         transform dense bias
#   g_ref    : (1, H)         LayerNorm gamma
#   beta_ref : (1, H)         LayerNorm beta
#   wdec_ref : (H, Dpad)      fused decoder weights (concat over keys, zero-padded to 128)
#   bdec_ref : (1, Dpad)      fused decoder biases  (zero-padded)
#   o_ref    : (TM, Dpad)     fused lane-dense output tile
# ----------------------------------------------------------------------------
def _visual_obj_head_kernel(x_ref, wd_ref, bd_ref, g_ref, beta_ref,
                            wdec_ref, bdec_ref, o_ref):
    x = x_ref[...]

    # --- BertPredictionHeadTransform: dense -> gelu -> LayerNorm (f32 accumulation) ---
    h = jnp.dot(x, wd_ref[...], preferred_element_type=jnp.float32) + bd_ref[...]
    h = _gelu_erf(h)

    # One-pass LN statistics: var = E[h^2] - E[h]^2 (saves one elementwise pass and
    # one cross-lane reduce vs. the centered two-pass formulation).
    mean = jnp.mean(h, axis=-1, keepdims=True)
    mean_sq = jnp.mean(h * h, axis=-1, keepdims=True)
    var = jnp.maximum(mean_sq - mean * mean, 0.0)
    h = (h - mean) * lax.rsqrt(var + LN_EPS)
    h = h * g_ref[...] + beta_ref[...]

    # --- all decoder heads as one lane-dense MXU pass + single unmasked store ---
    o_ref[...] = (
        jnp.dot(h.astype(wdec_ref.dtype), wdec_ref[...],
                preferred_element_type=jnp.float32)
        + bdec_ref[...]
    ).astype(o_ref.dtype)


def bert_visual_obj_head(hidden_states, params, compute_dtype=None, out_dtype=None):
    """hidden_states: (B, S, H). params: dict of weights (see init_params).

    compute_dtype / out_dtype default to hidden_states.dtype: bf16 activations flow
    through as bf16 (halving the dominant HBM streams, f32 accumulation preserved);
    f32 activations keep full f32 parity with the PyTorch reference.
    """
    B, S, H = hidden_states.shape
    R = B * S
    if compute_dtype is None:
        compute_dtype = hidden_states.dtype
    if out_dtype is None:
        out_dtype = hidden_states.dtype

    x2d = hidden_states.reshape(R, H).astype(compute_dtype)

    # --- fuse the per-key decoders: concat + zero-pad to a lane-dense width ---
    d_total = sum(VISUAL_LOSS_DIMS[k] for k in VISUAL_LOSSES)
    d_pad = _round_up(d_total, LANE)
    wdec = jnp.concatenate([params[f"dec_{k}_w"] for k in VISUAL_LOSSES], axis=1)
    bdec = jnp.concatenate([params[f"dec_{k}_b"] for k in VISUAL_LOSSES], axis=1)
    wdec = jnp.pad(wdec, ((0, 0), (0, d_pad - d_total))).astype(compute_dtype)
    bdec = jnp.pad(bdec, ((0, 0), (0, d_pad - d_total)))  # bias stays f32 (added post-dot)

    dense_w = params["dense_w"].astype(compute_dtype)
    dense_b = params["dense_b"]
    ln_gamma = params["ln_gamma"]
    ln_beta = params["ln_beta"]

    # --- row tiling: no wrapper-side padding; ragged last block is handled by Pallas
    #     (OOB reads tolerated, OOB writeback masked). Ensure >= MIN_GRID_STEPS tiles
    #     so the "parallel" row axis can shard across v7x's two TensorCores. ---
    num_steps = max(MIN_GRID_STEPS, pl.cdiv(R, TM_MAX))
    tm = max(SUBLANE, min(TM_MAX, _round_up(pl.cdiv(R, num_steps), SUBLANE)))
    grid = (pl.cdiv(R, tm),)

    in_specs = [
        pl.BlockSpec((tm, H), lambda i: (i, 0)),       # x: tiled over rows
        pl.BlockSpec((H, H), lambda i: (0, 0)),        # dense_w: resident (constant index)
        pl.BlockSpec((1, H), lambda i: (0, 0)),        # dense_b
        pl.BlockSpec((1, H), lambda i: (0, 0)),        # ln_gamma
        pl.BlockSpec((1, H), lambda i: (0, 0)),        # ln_beta
        pl.BlockSpec((H, d_pad), lambda i: (0, 0)),    # fused decoder weight
        pl.BlockSpec((1, d_pad), lambda i: (0, 0)),    # fused decoder bias
    ]
    out_spec = pl.BlockSpec((tm, d_pad), lambda i: (i, 0))
    out_shape = jax.ShapeDtypeStruct((R, d_pad), out_dtype)

    in_itemsize = jnp.dtype(compute_dtype).itemsize
    out_itemsize = jnp.dtype(out_dtype).itemsize
    cost = pl.CostEstimate(
        flops=2 * R * H * H + 2 * R * H * d_pad + 12 * R * H,
        transcendentals=R * H,                              # erf in gelu
        bytes_accessed=(R * H * in_itemsize                 # x read
                        + R * d_pad * out_itemsize          # fused output write
                        + (H * H + H * d_pad) * in_itemsize  # weights
                        + (3 * H + d_pad) * 4),              # biases / LN params
    )

    fused = pl.pallas_call(
        _visual_obj_head_kernel,
        out_shape=out_shape,
        grid_spec=pltpu.PrefetchScalarGridSpec(
            num_scalar_prefetch=0,
            grid=grid,
            in_specs=in_specs,
            out_specs=out_spec,
        ),
        compiler_params=pltpu.CompilerParams(
            # Row tiles are independent -> shard across TensorCores on v7x; neutral on v5e/v6e.
            dimension_semantics=("parallel",),
        ),
        cost_estimate=cost,
    )(x2d, dense_w, dense_b, ln_gamma, ln_beta, wdec, bdec)

    # --- lazy per-key views of the fused output: under jit these column slices fuse
    #     into downstream consumers (no extra eager HBM passes). ---
    fused3d = fused.reshape(B, S, d_pad)
    output = {}
    off = 0
    for k in VISUAL_LOSSES:
        d = VISUAL_LOSS_DIMS[k]
        output[k] = fused3d[:, :, off:off + d]
        off += d
    return output


def init_params(key, hidden=HIDDEN):
    keys = jax.random.split(key, 2 + 2 * len(VISUAL_LOSSES))
    scale = 0.02
    params = {
        "dense_w": scale * jax.random.normal(keys[0], (hidden, hidden), jnp.float32),
        "dense_b": scale * jax.random.normal(keys[1], (1, hidden), jnp.float32),
        "ln_gamma": jnp.ones((1, hidden), jnp.float32),
        "ln_beta": jnp.zeros((1, hidden), jnp.float32),
    }
    for i, k in enumerate(VISUAL_LOSSES):
        d = VISUAL_LOSS_DIMS[k]
        params[f"dec_{k}_w"] = scale * jax.random.normal(keys[2 + 2 * i], (hidden, d), jnp.float32)
        params[f"dec_{k}_b"] = scale * jax.random.normal(keys[3 + 2 * i], (1, d), jnp.float32)
    return params


def _reference(hidden_states, params):
    # Pure-JAX reference for sanity checking (mirrors the PyTorch module in f32).
    h = hidden_states @ params["dense_w"] + params["dense_b"][0]
    h = _gelu_erf(h)
    mean = jnp.mean(h, axis=-1, keepdims=True)
    var = jnp.mean(jnp.square(h - mean), axis=-1, keepdims=True)
    h = (h - mean) / jnp.sqrt(var + LN_EPS)
    h = h * params["ln_gamma"][0] + params["ln_beta"][0]
    return {k: h @ params[f"dec_{k}_w"] + params[f"dec_{k}_b"][0] for k in VISUAL_LOSSES}


if __name__ == "__main__":
    key = jax.random.PRNGKey(0)
    k_x, k_p = jax.random.split(key)

    B, S = 2, 8
    hidden_states = jax.random.normal(k_x, (B, S, HIDDEN), jnp.float32)
    params = init_params(k_p)

    # jit the whole wrapper so weight fusion / per-key slices fuse around the kernel.
    fn = jax.jit(bert_visual_obj_head)
    out = fn(hidden_states, params)
    out = jax.tree_util.tree_map(jax.block_until_ready, out)

    ref = _reference(hidden_states, params)
    for k in VISUAL_LOSSES:
        assert out[k].shape == (B, S, VISUAL_LOSS_DIMS[k])
        assert jnp.allclose(out[k], ref[k], atol=2e-4, rtol=2e-4), f"mismatch on {k}"

    print("KERNEL_OK")
</pallas_src>

<mosaic_0001>
module attributes {stable_mosaic.version = 11 : i64} {
  func.func @_visual_obj_head_kernel(%arg0: i32, %arg1: memref<8x128xf32, #tpu.memory_space<vmem>>, %arg2: memref<128x128xf32, #tpu.memory_space<vmem>>, %arg3: memref<1x128xf32, #tpu.memory_space<vmem>>, %arg4: memref<1x128xf32, #tpu.memory_space<vmem>>, %arg5: memref<1x128xf32, #tpu.memory_space<vmem>>, %arg6: memref<128x128xf32, #tpu.memory_space<vmem>>, %arg7: memref<1x128xf32, #tpu.memory_space<vmem>>, %arg8: memref<8x128xf32, #tpu.memory_space<vmem>>) attributes {dimension_semantics = [#tpu.dimension_semantics<parallel>], iteration_bounds = array<i64: 2>, scalar_prefetch = 0 : i64, scratch_operands = 0 : i64, tpu.core_type = #tpu.core_type<tc>, window_params = [{transform_indices = @transform_0, window_bounds = array<i64: 8, 128>}, {pipeline_mode = #tpu.pipeline_mode<synchronous>, transform_indices = @transform_1, window_bounds = array<i64: 128, 128>}, {pipeline_mode = #tpu.pipeline_mode<synchronous>, transform_indices = @transform_2, window_bounds = array<i64: 1, 128>}, {pipeline_mode = #tpu.pipeline_mode<synchronous>, transform_indices = @transform_3, window_bounds = array<i64: 1, 128>}, {pipeline_mode = #tpu.pipeline_mode<synchronous>, transform_indices = @transform_4, window_bounds = array<i64: 1, 128>}, {pipeline_mode = #tpu.pipeline_mode<synchronous>, transform_indices = @transform_5, window_bounds = array<i64: 128, 128>}, {pipeline_mode = #tpu.pipeline_mode<synchronous>, transform_indices = @transform_6, window_bounds = array<i64: 1, 128>}, {transform_indices = @transform_7, window_bounds = array<i64: 8, 128>}]} {
    %c0 = arith.constant 0 : index
    %c0_0 = arith.constant 0 : index
    %0 = vector.load %arg1[%c0, %c0_0] : memref<8x128xf32, #tpu.memory_space<vmem>>, vector<8x128xf32>
    %c0_1 = arith.constant 0 : index
    %c0_2 = arith.constant 0 : index
    %1 = vector.load %arg2[%c0_1, %c0_2] : memref<128x128xf32, #tpu.memory_space<vmem>>, vector<128x128xf32>
    %cst = arith.constant dense<0.000000e+00> : vector<8x128xf32>
    %2 = tpu.matmul %0, %1, %cst {dimension_numbers = #tpu.dot_dimension_numbers<[1], [0], [0], [1], [0, 0, 1, 1], [], []>} : vector<8x128xf32>, vector<128x128xf32>, vector<8x128xf32> -> vector<8x128xf32>
    %c0_3 = arith.constant 0 : index
    %c0_4 = arith.constant 0 : index
    %3 = vector.load %arg3[%c0_3, %c0_4] : memref<1x128xf32, #tpu.memory_space<vmem>>, vector<1x128xf32>
    %4 = vector.broadcast %3 : vector<1x128xf32> to vector<8x128xf32>
    %5 = arith.addf %2, %4 : vector<8x128xf32>
    %cst_5 = arith.constant 5.000000e-01 : f32
    %6 = vector.broadcast %cst_5 : f32 to vector<8x128xf32>
    %7 = arith.mulf %6, %5 : vector<8x128xf32>
    %cst_6 = arith.constant 2.000000e+00 : f32
    %8 = math.sqrt %cst_6 : f32
    %cst_7 = arith.constant 1.000000e+00 : f32
    %9 = arith.divf %cst_7, %8 : f32
    %10 = vector.broadcast %9 : f32 to vector<8x128xf32>
    %11 = arith.mulf %5, %10 : vector<8x128xf32>
    %12 = math.erf %11 : vector<8x128xf32>
    %cst_8 = arith.constant 1.000000e+00 : f32
    %13 = vector.broadcast %cst_8 : f32 to vector<8x128xf32>
    %14 = arith.addf %13, %12 : vector<8x128xf32>
    %15 = arith.mulf %7, %14 : vector<8x128xf32>
    %cst_9 = arith.constant dense<0.000000e+00> : vector<8xf32>
    %16 = vector.multi_reduction <add>, %15, %cst_9 [1] : vector<8x128xf32> to vector<8xf32>
    %17 = vector.shape_cast %16 : vector<8xf32> to vector<8x1xf32>
    %cst_10 = arith.constant 1.280000e+02 : f32
    %18 = vector.broadcast %cst_10 : f32 to vector<8x1xf32>
    %19 = arith.divf %17, %18 : vector<8x1xf32>
    %20 = arith.mulf %15, %15 : vector<8x128xf32>
    %cst_11 = arith.constant dense<0.000000e+00> : vector<8xf32>
    %21 = vector.multi_reduction <add>, %20, %cst_11 [1] : vector<8x128xf32> to vector<8xf32>
    %22 = vector.shape_cast %21 : vector<8xf32> to vector<8x1xf32>
    %cst_12 = arith.constant 1.280000e+02 : f32
    %23 = vector.broadcast %cst_12 : f32 to vector<8x1xf32>
    %24 = arith.divf %22, %23 : vector<8x1xf32>
    %25 = arith.mulf %19, %19 : vector<8x1xf32>
    %26 = arith.subf %24, %25 : vector<8x1xf32>
    %cst_13 = arith.constant 0.000000e+00 : f32
    %27 = vector.broadcast %cst_13 : f32 to vector<8x1xf32>
    %28 = arith.maximumf %26, %27 : vector<8x1xf32>
    %29 = vector.broadcast %19 : vector<8x1xf32> to vector<8x128xf32>
    %30 = arith.subf %15, %29 : vector<8x128xf32>
    %cst_14 = arith.constant 9.99999996E-13 : f32
    %31 = vector.broadcast %cst_14 : f32 to vector<8x1xf32>
    %32 = arith.addf %28, %31 : vector<8x1xf32>
    %33 = math.rsqrt %32 : vector<8x1xf32>
    %34 = vector.broadcast %33 : vector<8x1xf32> to vector<8x128xf32>
    %35 = arith.mulf %30, %34 : vector<8x128xf32>
    %c0_15 = arith.constant 0 : index
    %c0_16 = arith.constant 0 : index
    %36 = vector.load %arg4[%c0_15, %c0_16] : memref<1x128xf32, #tpu.memory_space<vmem>>, vector<1x128xf32>
    %37 = vector.broadcast %36 : vector<1x128xf32> to vector<8x128xf32>
    %38 = arith.mulf %35, %37 : vector<8x128xf32>
    %c0_17 = arith.constant 0 : index
    %c0_18 = arith.constant 0 : index
    %39 = vector.load %arg5[%c0_17, %c0_18] : memref<1x128xf32, #tpu.memory_space<vmem>>, vector<1x128xf32>
    %40 = vector.broadcast %39 : vector<1x128xf32> to vector<8x128xf32>
    %41 = arith.addf %38, %40 : vector<8x128xf32>
    %c0_19 = arith.constant 0 : index
    %c0_20 = arith.constant 0 : index
    %42 = vector.load %arg6[%c0_19, %c0_20] : memref<128x128xf32, #tpu.memory_space<vmem>>, vector<128x128xf32>
    %cst_21 = arith.constant dense<0.000000e+00> : vector<8x128xf32>
    %43 = tpu.matmul %41, %42, %cst_21 {dimension_numbers = #tpu.dot_dimension_numbers<[1], [0], [0], [1], [0, 0, 1, 1], [], []>} : vector<8x128xf32>, vector<128x128xf32>, vector<8x128xf32> -> vector<8x128xf32>
    %c0_22 = arith.constant 0 : index
    %c0_23 = arith.constant 0 : index
    %44 = vector.load %arg7[%c0_22, %c0_23] : memref<1x128xf32, #tpu.memory_space<vmem>>, vector<1x128xf32>
    %45 = vector.broadcast %44 : vector<1x128xf32> to vector<8x128xf32>
    %46 = arith.addf %43, %45 : vector<8x128xf32>
    %c0_24 = arith.constant 0 : index
    %c0_25 = arith.constant 0 : index
    %47 = vector.load %arg8[%c0_24, %c0_25] : memref<8x128xf32, #tpu.memory_space<vmem>>, vector<8x128xf32>
    tpu.vector_store %arg8[%c0_24, %c0_25], %46 {strides = array<i32>} : memref<8x128xf32, #tpu.memory_space<vmem>>, vector<8x128xf32>,
    return
  }
  func.func @transform_0(%arg0: i32) -> (i32, i32) {
    %c0_i32 = arith.constant 0 : i32
    %c0_i32_0 = arith.constant 0 : i32
    return %arg0, %c0_i32 : i32, i32
  }
  func.func @transform_1(%arg0: i32) -> (i32, i32) {
    %c0_i32 = arith.constant 0 : i32
    %c0_i32_0 = arith.constant 0 : i32
    %c0_i32_1 = arith.constant 0 : i32
    return %c0_i32, %c0_i32_0 : i32, i32
  }
  func.func @transform_2(%arg0: i32) -> (i32, i32) {
    %c0_i32 = arith.constant 0 : i32
    %c0_i32_0 = arith.constant 0 : i32
    %c0_i32_1 = arith.constant 0 : i32
    return %c0_i32, %c0_i32_0 : i32, i32
  }
  func.func @transform_3(%arg0: i32) -> (i32, i32) {
    %c0_i32 = arith.constant 0 : i32
    %c0_i32_0 = arith.constant 0 : i32
    %c0_i32_1 = arith.constant 0 : i32
    return %c0_i32, %c0_i32_0 : i32, i32
  }
  func.func @transform_4(%arg0: i32) -> (i32, i32) {
    %c0_i32 = arith.constant 0 : i32
    %c0_i32_0 = arith.constant 0 : i32
    %c0_i32_1 = arith.constant 0 : i32
    return %c0_i32, %c0_i32_0 : i32, i32
  }
  func.func @transform_5(%arg0: i32) -> (i32, i32) {
    %c0_i32 = arith.constant 0 : i32
    %c0_i32_0 = arith.constant 0 : i32
    %c0_i32_1 = arith.constant 0 : i32
    return %c0_i32, %c0_i32_0 : i32, i32
  }
  func.func @transform_6(%arg0: i32) -> (i32, i32) {
    %c0_i32 = arith.constant 0 : i32
    %c0_i32_0 = arith.constant 0 : i32
    %c0_i32_1 = arith.constant 0 : i32
    return %c0_i32, %c0_i32_0 : i32, i32
  }
  func.func @transform_7(%arg0: i32) -> (i32, i32) {
    %c0_i32 = arith.constant 0 : i32
    %c0_i32_0 = arith.constant 0 : i32
    return %arg0, %c0_i32 : i32, i32
  }
}

</mosaic_0001>

<bundles_post_ra>
// kernel: bert_visual_obj_head.1
= control target key start
LH: loop header
LB: loop body
LE: loop exit
PB: predicated region body
PF: predicated region fallthrough
CT: control target
= control target key end

     0   :  { %s782_s24 = smov 0   ;;  %s934_s0 = inlined_call_operand.vmem [shape: f32[16,128], index: 0, kind: input, shape index: {}]   ;;  %s935_s1 = inlined_call_operand.vmem [shape: f32[128,128], index: 1, kind: input, shape index: {}]   ;;  %s936_s2 = inlined_call_operand.vmem [shape: f32[1,128], index: 2, kind: input, shape index: {}]   ;;  %s937_s3 = inlined_call_operand.vmem [shape: f32[1,128], index: 3, kind: input, shape index: {}]   ;;  %s938_s4 = inlined_call_operand.vmem [shape: f32[1,128], index: 4, kind: input, shape index: {}]   ;;  %s939_s5 = inlined_call_operand.vmem [shape: f32[128,128], index: 5, kind: input, shape index: {}]   ;;  %s940_s6 = inlined_call_operand.vmem [shape: f32[1,128], index: 6, kind: input, shape index: {}]   ;;  %s941_s7 = inlined_call_operand.vmem [shape: f32[16,128], index: 7, kind: output, shape index: {}]  }
   0x1 LB: > { %s551_s25 = sadd.s32 4294967295, %s737_s24   ;;  %p555_p0 = scmp.ge.s32.totalorder %s737_s24, 1  ;;  %s737_s24 = sphi %s782_s24, %s17_s24  }
   0x2   : > { %p236_p1 = scmp.lt.s32.totalorder %s737_s24, 3 }
   0x4   : > { %p237_p2 = pnand %p555_p0, %p236_p1 }
   0x5   : > { %v275_v0 = vld [vmem:[%s935_s1] sm:$0xff] (!%p237_p2)  ;;  %v276_v1 = vld [vmem:[%s935_s1 + $0x8] sm:$0xff] (!%p237_p2)  ;;  %v277_v2 = vld [vmem:[%s935_s1 + $0x10] sm:$0xff] (!%p237_p2)  ;;  %v739_v3 = vmov (!%p237_p2), 0.0|0.0   ;;  %vm740_vm0 = vmmov (!%p237_p2), 0   ;;  %v741_v6 = vmov (!%p237_p2), 0.0  }
   0x6   : > { %240 = sbr.rel (%p237_p2) target bundleno = 656 (0x290), region = 48  ;;  %668 = vmatprep.subr.bf16.mxu0 (!%p237_p2), %v739_v3  ;;  %v669_v4 = vpack.c.bf16 (!%p237_p2), %v276_v1, %v275_v0  ;;  %v278_v5 = vld [vmem:[%s935_s1 + $0x18] sm:$0xff] (!%p237_p2)  ;;  %630 = vmatprep.mubr.msk.f32.mxu0 (!%p237_p2), %vm740_vm0, %v741_v6  ;;  %v279_v8 = vld [vmem:[%s935_s1 + $0x20] sm:$0xff] (!%p237_p2)  ;;  %v280_v9 = vld [vmem:[%s935_s1 + $0x28] sm:$0xff] (!%p237_p2)  ;;  %p266_p3 = scmp.lt.s32.totalorder (!%p237_p2), %s551_s25, 1 }
   0x7   : > { %692 = vmatprep.subr.bf16.mxu1 (!%p237_p2), %v739_v3  ;;  %665 = vmatprep.mubr.msk.f32.mxu1 (!%p237_p2), %vm740_vm0, %v741_v6  ;;  %v672_v7 = vpack.c.bf16 (!%p237_p2), %v278_v5, %v277_v2  ;;  %v675_v10 = vpack.c.bf16 (!%p237_p2), %v280_v9, %v279_v8  ;;  %v281_v11 = vld [vmem:[%s935_s1 + $0x30] sm:$0xff] (!%p237_p2)  ;;  %v282_v12 = vld [vmem:[%s935_s1 + $0x38] sm:$0xff] (!%p237_p2)  ;;  %v283_v14 = vld [vmem:[%s935_s1 + $0x40] sm:$0xff] (!%p237_p2) }
   0x8   : > { %670 = vmatpush3.bf16.msra.mxu0 (!%p237_p2), %v669_v4  ;;  %v678_v13 = vpack.c.bf16 (!%p237_p2), %v282_v12, %v281_v11  ;;  %v284_v15 = vld [vmem:[%s935_s1 + $0x48] sm:$0xff] (!%p237_p2)  ;;  %v285_v17 = vld [vmem:[%s935_s1 + $0x50] sm:$0xff] (!%p237_p2)  ;;  %v286_v18 = vld [vmem:[%s935_s1 + $0x58] sm:$0xff] (!%p237_p2) }
   0x9   : > { %671 = vmatprep.subr.bf16.mxu0 (!%p237_p2), %v739_v3  ;;  %v681_v16 = vpack.c.bf16 (!%p237_p2), %v284_v15, %v283_v14  ;;  %v684_v19 = vpack.c.bf16 (!%p237_p2), %v286_v18, %v285_v17  ;;  %v287_v20 = vld [vmem:[%s935_s1 + $0x60] sm:$0xff] (!%p237_p2)  ;;  %v288_v21 = vld [vmem:[%s935_s1 + $0x68] sm:$0xff] (!%p237_p2)  ;;  %v289_v23 = vld [vmem:[%s935_s1 + $0x70] sm:$0xff] (!%p237_p2) }
   0xa   : > { %v687_v22 = vpack.c.bf16 (!%p237_p2), %v288_v21, %v287_v20  ;;  %v290_v24 = vld [vmem:[%s935_s1 + $0x78] sm:$0xff] (!%p237_p2)  ;;  %v404_v27 = vld [vmem:[%s939_s5] sm:$0xff] (!%p237_p2)  ;;  %v405_v28 = vld [vmem:[%s939_s5 + $0x8] sm:$0xff] (!%p237_p2) }
   0xb   : > { %v690_v25 = vpack.c.bf16 (!%p237_p2), %v290_v24, %v289_v23  ;;  %v693_v29 = vpack.c.bf16 (!%p237_p2), %v405_v28, %v404_v27  ;;  %v558_v30 = vld [vmem:[%s936_s2] ss:$0 sm:$0xff] (!%p237_p2)  ;;  %v406_v40 = vld [vmem:[%s939_s5 + $0x10] sm:$0xff] (!%p237_p2)  ;;  %v407_v41 = vld [vmem:[%s939_s5 + $0x18] sm:$0xff] (!%p237_p2) }
   0xc   : > { %673 = vmatpush3.bf16.msra.mxu0 (!%p237_p2), %v672_v7  ;;  %v696_v42 = vpack.c.bf16 (!%p237_p2), %v407_v41, %v406_v40  ;;  %v408_v43 = vld [vmem:[%s939_s5 + $0x20] sm:$0xff] (!%p237_p2)  ;;  %v409_v44 = vld [vmem:[%s939_s5 + $0x28] sm:$0xff] (!%p237_p2)  ;;  %v410_v46 = vld [vmem:[%s939_s5 + $0x30] sm:$0xff] (!%p237_p2) }
   0xd   : > { %674 = vmatprep.subr.bf16.mxu0 %v739_v3  ;;  %s943_s25 = smov (!%p266_p3, %s551_s25), 1  ;;  %694 = vmatpush3.bf16.msra.mxu1 %v693_v29  ;;  %v699_v45 = vpack.c.bf16 %v409_v44, %v408_v43  ;;  %v411_v47 = vld [vmem:[%s939_s5 + $0x38] sm:$0xff]  ;;  %v412_v49 = vld [vmem:[%s939_s5 + $0x40] sm:$0xff]  ;;  %v413_v50 = vld [vmem:[%s939_s5 + $0x48] sm:$0xff] }
   0xe   : > { %s556_s14 = sshll.u32 %s943_s25, 3  ;;  %695 = vmatprep.subr.bf16.mxu1 %v739_v3  ;;  %v702_v48 = vpack.c.bf16 %v411_v47, %v410_v46  ;;  %v705_v51 = vpack.c.bf16 %v413_v50, %v412_v49  ;;  %v414_v52 = vld [vmem:[%s939_s5 + $0x50] sm:$0xff]  ;;  %v415_v53 = vld [vmem:[%s939_s5 + $0x58] sm:$0xff]  ;;  %v416_v55 = vld [vmem:[%s939_s5 + $0x60] sm:$0xff] }
   0xf   : > { %s269_s17 = scalar_lea.vmem %s934_s0, %s556_s14  ;;  %v708_v54 = vpack.c.bf16 %v415_v53, %v414_v52  ;;  %v417_v56 = vld [vmem:[%s939_s5 + $0x68] sm:$0xff]  ;;  %v418_v58 = vld [vmem:[%s939_s5 + $0x70] sm:$0xff]  ;;  %v419_v59 = vld [vmem:[%s939_s5 + $0x78] sm:$0xff]  ;;  %s273_s20 = scalar_lea.vmem %s941_s7, %s556_s14 }
  0x10   : > { %676 = vmatpush3.bf16.msra.mxu0 %v675_v10  ;;  %v274_v26 = vld [vmem:[%s269_s17] sm:$0xff]  ;;  %v711_v57 = vpack.c.bf16 %v417_v56, %v416_v55  ;;  %v714_v60 = vpack.c.bf16 %v419_v59, %v418_v58 }
  0x11   : > { %677 = vmatprep.subr.bf16.mxu0 %v739_v3  ;;  %697 = vmatpush3.bf16.msra.mxu1 %v696_v42  ;;  %v559_v8 = vld [vmem:[%s937_s3] ss:$0 sm:$0xff] }
  0x12   : > { %698 = vmatprep.subr.bf16.mxu1 %v739_v3  ;;  %v561_v12 = vld [vmem:[%s940_s6] ss:$0 sm:$0xff] }
  0x14   : > { %679 = vmatpush3.bf16.msra.mxu0 %v678_v13 }
  0x15   : > { %680 = vmatprep.subr.bf16.mxu0 %v739_v3  ;;  %700 = vmatpush3.bf16.msra.mxu1 %v699_v45 }
  0x16   : > { %701 = vmatprep.subr.bf16.mxu1 %v739_v3 }
  0x18   : > { %682 = vmatpush3.bf16.msra.mxu0 %v681_v16 }
  0x19   : > { %683 = vmatprep.subr.bf16.mxu0 %v739_v3  ;;  %703 = vmatpush3.bf16.msra.mxu1 %v702_v48 }
  0x1a   : > { %704 = vmatprep.subr.bf16.mxu1 %v739_v3 }
  0x1c   : > { %685 = vmatpush3.bf16.msra.mxu0 %v684_v19 }
  0x1d   : > { %686 = vmatprep.subr.bf16.mxu0 %v739_v3  ;;  %706 = vmatpush3.bf16.msra.mxu1 %v705_v51 }
  0x1e   : > { %707 = vmatprep.subr.bf16.mxu1 %v739_v3 }
  0x20   : > { %688 = vmatpush3.bf16.msra.mxu0 %v687_v22 }
  0x21   : > { %689 = vmatprep.subr.bf16.mxu0 %v739_v3  ;;  %709 = vmatpush3.bf16.msra.mxu1 %v708_v54 }
  0x22   : > { %710 = vmatprep.subr.bf16.mxu1 %v739_v3 }
  0x24   : > { %691 = vmatpush3.bf16.msra.mxu0 %v690_v25 }
  0x25   : > { %712 = vmatpush3.bf16.msra.mxu1 %v711_v57 }
  0x26   : > { %713 = vmatprep.subr.bf16.mxu1 %v739_v3  ;;  %v560_v3 = vld [vmem:[%s938_s4] ss:$0 sm:$0xff] }
  0x27   : > { %631 = vmatmul.mubr.f32.vlgmr.msra.gmra.mrb[0].mxu0 %v274_v26 }
  0x29   : > { %715 = vmatpush3.bf16.msra.mxu1 %v714_v60 }
  0xfa   : > { %v364_v31 = vpop.f32.mrb[0].mxu0 }
  0xfb   : > { %v365_v32 = vadd.f32 %v558_v30, %v364_v31  ;;  %v632_v33 = vpop.f32.mrb[1].mxu0 }
  0xfd   : > { %v369_v34 = vmul.f32 0.70710677, %v365_v32  ;;  %v368_v36 = vmul.f32 0.5, %v365_v32 }
  0xff   : > { %727 = verf.f32 %v369_v34 }
 0x109   : > { %v728_v35 = vpop.eup %727 }
 0x10a   : > { %v371_v37 = vadd.f32 1.0, %v728_v35 }
 0x10c   : > { %v372_v38 = vmul.f32 %v371_v37, %v368_v36 }
 0x10e   : > { %373 = vadd.xlane.f32.xlu0 %v372_v38  ;;  %v377_v39 = vmul.f32 %v372_v38, %v372_v38 }
 0x112   : > { %378 = vadd.xlane.f32.xlu0 %v377_v39 }
 0x19b   : > { %v374_v61 = vpop.xlane.xlu0 %373 }
 0x19c   : > { %v376_v62 = vmul.f32 0.0078125, %v374_v61 }
 0x19e   : > { %v381_v0 = vmul.f32 %v376_v62, %v376_v62  ;;  %v384_v6 = vsub.f32 %v372_v38, %v376_v62 }
 0x19f   : > { %v379_v63 = vpop.xlane.xlu0 %378 }
 0x1a0   : > { %v380_v1 = vmul.f32 0.0078125, %v379_v63 }
 0x1a2   : > { %v382_v2 = vsub.f32 %v380_v1, %v381_v0 }
 0x1a4   : > { %v383_v4 = vmax.f32 %v382_v2, 0.0 }
 0x1a6   : > { %v385_v5 = vadd.f32 1e-12, %v383_v4 }
 0x1a8   : > { %729 = vrsqrt.f32 %v385_v5 }
 0x1b2   : > { %v730_v7 = vpop.eup %729 }
 0x1b3   : > { %v387_v9 = vmul.f32 %v730_v7, %v384_v6 }
 0x1b5   : > { %v395_v10 = vmul.f32 %v559_v8, %v387_v9 }
 0x1b7   : > { %v403_v11 = vadd.f32 %v560_v3, %v395_v10 }
 0x1b9   : > { %666 = vmatmul.mubr.f32.vlgmr.msra.gmra.mrb[0].mxu1 %v403_v11 }
 0x28c   : > { %v493_v13 = vpop.f32.mrb[0].mxu1 }
 0x28d   : > { %v494_v14 = vadd.f32 %v561_v12, %v493_v13  ;;  %v667_v15 = vpop.f32.mrb[1].mxu1 }
 0x28f   : > { %497 = vst [vmem:[%s273_s20] sm:$0xff] %v494_v14 }
 0x290 PF: > { %s17_s24 = sadd.s32 1, %s737_s24  }
 0x291   : > { %p14_p4 = scmp.ge.s32.totalorder %s17_s24, 4  }
 0x293   :  { %16 = sbr.rel (!%p14_p4) target bundleno = 1 (0x1), region = 78 }

</bundles_post_ra>
